<compile_context>
chip_gen: v6e
topology: v6e:2x2x1
jax: 0.10.0
libtpu: 0.0.40
codegen_flags: <defaults>
</compile_context>

<pallas_src>
import functools

import jax
import jax.numpy as jnp
from jax import lax
from jax.experimental import pallas as pl
from jax.experimental.pallas import tpu as pltpu


def _s2_conv_kernel(x_ref, col_ref, w1_ref, b1_ref, wkf_ref, bkf_ref,
                    o_ref, patch_ref, *, H, W, Cm, K):
    """s2_conv forward for one batch element.

    x_ref     : (1, C, H*W)    input (both channel halves), original dtype
    col_ref   : (1, H*W)       int32, (p mod W) for every flattened position
    w1_ref    : (Cm, Cm)       bf16, first 1x1 conv weight (out, in)
    b1_ref    : (Cm, 1)        f32
    wkf_ref   : (Cm, K*K*Cm)   bf16, KxK weight with trailing 1x1 folded in,
                               laid out (out, (kh, kw, in))
    bkf_ref   : (Cm, 1)        f32, folded bias
    o_ref     : (1, Cm, 2*H*W) output slab: row i = [y1_i | conv(y2)_i]
    patch_ref : (K*K*Cm, H*W)  f32 VMEM scratch, im2col patch matrix
    """
    P = K // 2
    HW = H * W

    xb = x_ref[0]                                       # (C, HW)
    y1 = xb[:Cm, :]                                     # passthrough half
    y2 = xb[Cm:, :].astype(jnp.bfloat16)                # conv-branch half

    # ---- 1x1 conv + bias + ReLU (bf16 MXU inputs, f32 accumulation) --------
    t = jnp.dot(w1_ref[...], y2, preferred_element_type=jnp.float32)
    t = jnp.maximum(t + b1_ref[...], 0.0)               # (Cm, HW) f32

    # ---- KxK conv (trailing 1x1 pre-folded) as a single im2col matmul ------
    # In flattened H*W space a (kh, kw) tap of the zero-padded conv is a
    # static lane shift by d = (kh-P)*W + (kw-P).  Zero-extending t by
    # pad_n = P*W + P lanes on both sides supplies the zeros for rows outside
    # the image (no row mask needed); taps that wrap across a row boundary are
    # zeroed with a column mask derived from col_ref (precomputed in the
    # wrapper to avoid vector integer div/mod on the VPU).
    pad_n = P * W + P
    zext = jnp.zeros((Cm, pad_n), jnp.float32)
    t_ext = jnp.concatenate([zext, t, zext], axis=1)    # (Cm, HW + 2*pad_n)
    col = col_ref[...]                                  # (1, HW) int32

    col_masks = []
    for kw in range(K):
        dw = kw - P
        if dw == 0:
            col_masks.append(None)
        else:
            col_masks.append((col + dw >= 0) & (col + dw < W))

    for kh in range(K):
        dh = kh - P
        for kw in range(K):
            dw = kw - P
            d = dh * W + dw
            k = kh * K + kw
            shifted = t_ext[:, pad_n + d: pad_n + d + HW]          # (Cm, HW)
            if col_masks[kw] is not None:
                shifted = jnp.where(col_masks[kw], shifted,
                                    jnp.zeros_like(shifted))
            patch_ref[k * Cm:(k + 1) * Cm, :] = shifted

    # One deep-contraction matmul: (Cm, K*K*Cm) @ (K*K*Cm, HW).
    patches = patch_ref[...].astype(jnp.bfloat16)
    conv = jnp.dot(wkf_ref[...], patches,
                   preferred_element_type=jnp.float32) + bkf_ref[...]

    # ---- ChannelShuffle(groups=2) of cat(y1, conv), emitted in place -------
    # Output row i is [y1_i | conv_i]; the wrapper's free (B, Cm, 2*H*W) ->
    # (B, C, H, W) reshape interleaves them as channels (2i, 2i+1).
    o_ref[0] = jnp.concatenate(
        [y1.astype(o_ref.dtype), conv.astype(o_ref.dtype)], axis=1)


def s2_conv_forward(x_nchw, params, kernel_size):
    """Full s2_conv forward. x_nchw: (B, C, H, W)."""
    if kernel_size % 2 == 0:
        kernel_size -= 1
    K = kernel_size
    B, C, H, W = x_nchw.shape
    Cm = C // 2
    HW = H * W
    w1, b1, wk, bk, w2, b2 = params

    # ---- trace-time weight prep (tiny arrays) -------------------------------
    # Fold the trailing 1x1 conv into the KxK conv (algebraically exact):
    #   wkf[o,i,kh,kw] = sum_j w2[o,j] * wk[j,i,kh,kw],   bkf = w2 @ bk + b2.
    w2m = w2.reshape(Cm, Cm)
    wkf = jnp.einsum('oj,jikl->oikl', w2m, wk)
    bkf = w2m @ bk + b2
    # Kernel layouts: lhs matrices for (channels, H*W) matmuls; KxK weight
    # flattened to match the im2col tap order (kh outer, kw, then cin).
    w1_k = w1.reshape(Cm, Cm).astype(jnp.bfloat16)
    wkf_k = jnp.transpose(wkf, (0, 2, 3, 1)).reshape(Cm, K * K * Cm)
    wkf_k = wkf_k.astype(jnp.bfloat16)
    b1_k = b1.reshape(Cm, 1).astype(jnp.float32)
    bkf_k = bkf.reshape(Cm, 1).astype(jnp.float32)

    # Column index (p mod W) of every flattened spatial position, used by the
    # in-kernel edge masks.
    colmap = jnp.tile(jnp.arange(W, dtype=jnp.int32), H).reshape(1, HW)

    # Free row-major reshape: NCHW with spatial flattened onto the lane dim.
    x_flat = x_nchw.reshape(B, C, HW)

    kern = functools.partial(_s2_conv_kernel, H=H, W=W, Cm=Cm, K=K)
    # TODO(synk): for very large H*W (full-resolution SR inference on v7x) add
    # a row-tiled grid axis with a haloed manual DMA so per-step VMEM stays
    # under 64 MiB; at training-patch sizes a whole image fits comfortably.
    out = pl.pallas_call(
        kern,
        out_shape=jax.ShapeDtypeStruct((B, Cm, 2 * HW), x_nchw.dtype),
        grid=(B,),
        in_specs=[
            pl.BlockSpec((1, C, HW), lambda b: (b, 0, 0)),      # x (both halves)
            pl.BlockSpec((1, HW), lambda b: (0, 0)),            # column indices
            pl.BlockSpec((Cm, Cm), lambda b: (0, 0)),           # w1
            pl.BlockSpec((Cm, 1), lambda b: (0, 0)),            # b1
            pl.BlockSpec((Cm, K * K * Cm), lambda b: (0, 0)),   # folded KxK wt
            pl.BlockSpec((Cm, 1), lambda b: (0, 0)),            # folded bias
        ],
        out_specs=pl.BlockSpec((1, Cm, 2 * HW), lambda b: (b, 0, 0)),
        scratch_shapes=[pltpu.VMEM((K * K * Cm, HW), jnp.float32)],
        compiler_params=pltpu.CompilerParams(
            dimension_semantics=("parallel",),          # megacore-shard over B
            vmem_limit_bytes=64 * 1024 * 1024),         # <= physical, all gens
    )(x_flat, colmap, w1_k, b1_k, wkf_k, bkf_k)

    # Free reshape realizing ChannelShuffle(groups=2):
    # out channel 2*i = y1_i (passthrough), 2*i + 1 = conv(y2)_i.
    return out.reshape(B, C, H, W)


def init_params(key, in_channels, kernel_size):
    """Deterministic synthetic parameters (PyTorch conv weight conventions)."""
    if kernel_size % 2 == 0:
        kernel_size -= 1
    Cm = in_channels // 2
    K = kernel_size
    ks = jax.random.split(key, 6)
    w1 = jax.random.normal(ks[0], (Cm, Cm, 1, 1), jnp.float32) * 0.2
    b1 = jax.random.normal(ks[1], (Cm,), jnp.float32) * 0.1
    wk = jax.random.normal(ks[2], (Cm, Cm, K, K), jnp.float32) * 0.2
    bk = jax.random.normal(ks[3], (Cm,), jnp.float32) * 0.1
    w2 = jax.random.normal(ks[4], (Cm, Cm, 1, 1), jnp.float32) * 0.2
    b2 = jax.random.normal(ks[5], (Cm,), jnp.float32) * 0.1
    return (w1, b1, wk, bk, w2, b2)


def ref_forward(x, params, kernel_size):
    """Pure-JAX reference (f32 lax convs) replicating the PyTorch module."""
    if kernel_size % 2 == 0:
        kernel_size -= 1
    K = kernel_size
    P = K // 2
    w1, b1, wk, bk, w2, b2 = params
    B, C, H, W = x.shape
    Cm = C // 2
    y1, y2 = x[:, :Cm], x[:, Cm:]
    dn = ('NCHW', 'OIHW', 'NCHW')
    hp = lax.Precision.HIGHEST
    t = lax.conv_general_dilated(y2, w1, (1, 1), 'VALID', dimension_numbers=dn,
                                 precision=hp) + b1.reshape(1, Cm, 1, 1)
    t = jnp.maximum(t, 0.0)
    t = lax.conv_general_dilated(t, wk, (1, 1), [(P, P), (P, P)],
                                 dimension_numbers=dn,
                                 precision=hp) + bk.reshape(1, Cm, 1, 1)
    t = lax.conv_general_dilated(t, w2, (1, 1), 'VALID', dimension_numbers=dn,
                                 precision=hp) + b2.reshape(1, Cm, 1, 1)
    y = jnp.stack([y1, t], axis=2).reshape(B, C, H, W)   # channel shuffle
    return y


if __name__ == "__main__":
    B, C, H, W = 2, 4, 16, 16
    kernel_size = 3

    key = jax.random.PRNGKey(0)
    kx, kp = jax.random.split(key)
    x = jax.random.normal(kx, (B, C, H, W), jnp.float32)
    params = init_params(kp, C, kernel_size)

    out = jax.block_until_ready(s2_conv_forward(x, params, kernel_size))
    ref = jax.block_until_ready(ref_forward(x, params, kernel_size))

    assert out.shape == (B, C, H, W)
    # Even output channels are the untouched y1 half (exact passthrough).
    assert jnp.allclose(out[:, 0::2], x[:, : C // 2], atol=1e-6, rtol=0.0), \
        "y1 passthrough mismatch"
    # Conv branch uses bf16 MXU inputs (f32 accumulation) -> relaxed tolerance.
    max_err = jnp.max(jnp.abs(out - ref))
    assert jnp.allclose(out, ref, atol=2e-2, rtol=2e-2), f"max abs err {max_err}"

    print("KERNEL_OK")
</pallas_src>

<mosaic_0001>
module attributes {stable_mosaic.version = 11 : i64} {
  func.func @_s2_conv_kernel(%arg0: i32, %arg1: memref<1x4x256xf32, #tpu.memory_space<vmem>>, %arg2: memref<1x256xi32, #tpu.memory_space<vmem>>, %arg3: memref<2x2xbf16, #tpu.memory_space<vmem>>, %arg4: memref<2x1xf32, #tpu.memory_space<vmem>>, %arg5: memref<2x18xbf16, #tpu.memory_space<vmem>>, %arg6: memref<2x1xf32, #tpu.memory_space<vmem>>, %arg7: memref<1x2x512xf32, #tpu.memory_space<vmem>>, %arg8: memref<18x256xf32, #tpu.memory_space<vmem>>) attributes {dimension_semantics = [#tpu.dimension_semantics<parallel>], iteration_bounds = array<i64: 2>, scalar_prefetch = 0 : i64, scratch_operands = 1 : i64, tpu.core_type = #tpu.core_type<tc>, window_params = [{transform_indices = @transform_0, window_bounds = array<i64: 1, 4, 256>}, {pipeline_mode = #tpu.pipeline_mode<synchronous>, transform_indices = @transform_1, window_bounds = array<i64: 1, 256>}, {pipeline_mode = #tpu.pipeline_mode<synchronous>, transform_indices = @transform_2, window_bounds = array<i64: 2, 2>}, {pipeline_mode = #tpu.pipeline_mode<synchronous>, transform_indices = @transform_3, window_bounds = array<i64: 2, 1>}, {pipeline_mode = #tpu.pipeline_mode<synchronous>, transform_indices = @transform_4, window_bounds = array<i64: 2, 18>}, {pipeline_mode = #tpu.pipeline_mode<synchronous>, transform_indices = @transform_5, window_bounds = array<i64: 2, 1>}, {transform_indices = @transform_6, window_bounds = array<i64: 1, 2, 512>}]} {
    %c0 = arith.constant 0 : index
    %c0_0 = arith.constant 0 : index
    %c0_1 = arith.constant 0 : index
    %0 = vector.load %arg1[%c0, %c0_0, %c0_1] : memref<1x4x256xf32, #tpu.memory_space<vmem>>, vector<1x4x256xf32>
    %1 = vector.shape_cast %0 : vector<1x4x256xf32> to vector<4x256xf32>
    %2 = vector.extract_strided_slice %1 {offsets = [0, 0], sizes = [2, 256], strides = [1, 1]} : vector<4x256xf32> to vector<2x256xf32>
    %3 = vector.extract_strided_slice %1 {offsets = [2, 0], sizes = [2, 256], strides = [1, 1]} : vector<4x256xf32> to vector<2x256xf32>
    %4 = arith.truncf %3 : vector<2x256xf32> to vector<2x256xbf16>
    %c0_2 = arith.constant 0 : index
    %c0_3 = arith.constant 0 : index
    %5 = vector.load %arg3[%c0_2, %c0_3] : memref<2x2xbf16, #tpu.memory_space<vmem>>, vector<2x2xbf16>
    %cst = arith.constant dense<0.000000e+00> : vector<2x256xf32>
    %6 = tpu.matmul %5, %4, %cst {dimension_numbers = #tpu.dot_dimension_numbers<[1], [0], [0], [1], [0, 0, 1, 1], [], []>} : vector<2x2xbf16>, vector<2x256xbf16>, vector<2x256xf32> -> vector<2x256xf32>
    %c0_4 = arith.constant 0 : index
    %c0_5 = arith.constant 0 : index
    %7 = vector.load %arg4[%c0_4, %c0_5] : memref<2x1xf32, #tpu.memory_space<vmem>>, vector<2x1xf32>
    %8 = vector.broadcast %7 : vector<2x1xf32> to vector<2x256xf32>
    %9 = arith.addf %6, %8 : vector<2x256xf32>
    %cst_6 = arith.constant 0.000000e+00 : f32
    %10 = vector.broadcast %cst_6 : f32 to vector<2x256xf32>
    %11 = arith.maximumf %9, %10 : vector<2x256xf32>
    %cst_7 = arith.constant 0.000000e+00 : f32
    %12 = vector.broadcast %cst_7 : f32 to vector<2x17xf32>
    %13 = tpu.concatenate %12, %11, %12 in 1 : vector<2x17xf32>, vector<2x256xf32>, vector<2x17xf32> -> vector<2x290xf32>
    %c0_8 = arith.constant 0 : index
    %c0_9 = arith.constant 0 : index
    %14 = vector.load %arg2[%c0_8, %c0_9] : memref<1x256xi32, #tpu.memory_space<vmem>>, vector<1x256xi32>
    %c-1_i32 = arith.constant -1 : i32
    %15 = vector.broadcast %c-1_i32 : i32 to vector<1x256xi32>
    %16 = arith.addi %14, %15 : vector<1x256xi32>
    %c0_i32 = arith.constant 0 : i32
    %17 = vector.broadcast %c0_i32 : i32 to vector<1x256xi32>
    %18 = arith.cmpi sge, %16, %17 : vector<1x256xi32>
    %c-1_i32_10 = arith.constant -1 : i32
    %19 = vector.broadcast %c-1_i32_10 : i32 to vector<1x256xi32>
    %20 = arith.addi %14, %19 : vector<1x256xi32>
    %c16_i32 = arith.constant 16 : i32
    %21 = vector.broadcast %c16_i32 : i32 to vector<1x256xi32>
    %22 = arith.cmpi slt, %20, %21 : vector<1x256xi32>
    %23 = arith.andi %18, %22 : vector<1x256xi1>
    %c1_i32 = arith.constant 1 : i32
    %24 = vector.broadcast %c1_i32 : i32 to vector<1x256xi32>
    %25 = arith.addi %14, %24 : vector<1x256xi32>
    %c0_i32_11 = arith.constant 0 : i32
    %26 = vector.broadcast %c0_i32_11 : i32 to vector<1x256xi32>
    %27 = arith.cmpi sge, %25, %26 : vector<1x256xi32>
    %c1_i32_12 = arith.constant 1 : i32
    %28 = vector.broadcast %c1_i32_12 : i32 to vector<1x256xi32>
    %29 = arith.addi %14, %28 : vector<1x256xi32>
    %c16_i32_13 = arith.constant 16 : i32
    %30 = vector.broadcast %c16_i32_13 : i32 to vector<1x256xi32>
    %31 = arith.cmpi slt, %29, %30 : vector<1x256xi32>
    %32 = arith.andi %27, %31 : vector<1x256xi1>
    %33 = vector.extract_strided_slice %13 {offsets = [0, 0], sizes = [2, 256], strides = [1, 1]} : vector<2x290xf32> to vector<2x256xf32>
    %cst_14 = arith.constant 0.000000e+00 : f32
    %34 = vector.broadcast %cst_14 : f32 to vector<2x256xf32>
    %35 = vector.shape_cast %23 : vector<1x256xi1> to vector<1x256xi1>
    %36 = vector.broadcast %35 : vector<1x256xi1> to vector<2x256xi1>
    %37 = arith.select %36, %33, %34 : vector<2x256xi1>, vector<2x256xf32>
    %c0_15 = arith.constant 0 : index
    %c0_16 = arith.constant 0 : index
    %38 = vector.load %arg8[%c0_15, %c0_16] : memref<18x256xf32, #tpu.memory_space<vmem>>, vector<2x256xf32>
    tpu.vector_store %arg8[%c0_15, %c0_16], %37 {strides = array<i32>} : memref<18x256xf32, #tpu.memory_space<vmem>>, vector<2x256xf32>,
    %39 = vector.extract_strided_slice %13 {offsets = [0, 1], sizes = [2, 256], strides = [1, 1]} : vector<2x290xf32> to vector<2x256xf32>
    %c2 = arith.constant 2 : index
    %c0_17 = arith.constant 0 : index
    %40 = vector.load %arg8[%c2, %c0_17] : memref<18x256xf32, #tpu.memory_space<vmem>>, vector<2x256xf32>
    tpu.vector_store %arg8[%c2, %c0_17], %39 {strides = array<i32>} : memref<18x256xf32, #tpu.memory_space<vmem>>, vector<2x256xf32>,
    %41 = vector.extract_strided_slice %13 {offsets = [0, 2], sizes = [2, 256], strides = [1, 1]} : vector<2x290xf32> to vector<2x256xf32>
    %cst_18 = arith.constant 0.000000e+00 : f32
    %42 = vector.broadcast %cst_18 : f32 to vector<2x256xf32>
    %43 = vector.shape_cast %32 : vector<1x256xi1> to vector<1x256xi1>
    %44 = vector.broadcast %43 : vector<1x256xi1> to vector<2x256xi1>
    %45 = arith.select %44, %41, %42 : vector<2x256xi1>, vector<2x256xf32>
    %c4 = arith.constant 4 : index
    %c0_19 = arith.constant 0 : index
    %46 = vector.load %arg8[%c4, %c0_19] : memref<18x256xf32, #tpu.memory_space<vmem>>, vector<2x256xf32>
    tpu.vector_store %arg8[%c4, %c0_19], %45 {strides = array<i32>} : memref<18x256xf32, #tpu.memory_space<vmem>>, vector<2x256xf32>,
    %47 = vector.extract_strided_slice %13 {offsets = [0, 16], sizes = [2, 256], strides = [1, 1]} : vector<2x290xf32> to vector<2x256xf32>
    %cst_20 = arith.constant 0.000000e+00 : f32
    %48 = vector.broadcast %cst_20 : f32 to vector<2x256xf32>
    %49 = vector.shape_cast %23 : vector<1x256xi1> to vector<1x256xi1>
    %50 = vector.broadcast %49 : vector<1x256xi1> to vector<2x256xi1>
    %51 = arith.select %50, %47, %48 : vector<2x256xi1>, vector<2x256xf32>
    %c6 = arith.constant 6 : index
    %c0_21 = arith.constant 0 : index
    %52 = vector.load %arg8[%c6, %c0_21] : memref<18x256xf32, #tpu.memory_space<vmem>>, vector<2x256xf32>
    tpu.vector_store %arg8[%c6, %c0_21], %51 {strides = array<i32>} : memref<18x256xf32, #tpu.memory_space<vmem>>, vector<2x256xf32>,
    %53 = vector.extract_strided_slice %13 {offsets = [0, 17], sizes = [2, 256], strides = [1, 1]} : vector<2x290xf32> to vector<2x256xf32>
    %c8 = arith.constant 8 : index
    %c0_22 = arith.constant 0 : index
    %54 = vector.load %arg8[%c8, %c0_22] : memref<18x256xf32, #tpu.memory_space<vmem>>, vector<2x256xf32>
    tpu.vector_store %arg8[%c8, %c0_22], %53 {strides = array<i32>} : memref<18x256xf32, #tpu.memory_space<vmem>>, vector<2x256xf32>,
    %55 = vector.extract_strided_slice %13 {offsets = [0, 18], sizes = [2, 256], strides = [1, 1]} : vector<2x290xf32> to vector<2x256xf32>
    %cst_23 = arith.constant 0.000000e+00 : f32
    %56 = vector.broadcast %cst_23 : f32 to vector<2x256xf32>
    %57 = vector.shape_cast %32 : vector<1x256xi1> to vector<1x256xi1>
    %58 = vector.broadcast %57 : vector<1x256xi1> to vector<2x256xi1>
    %59 = arith.select %58, %55, %56 : vector<2x256xi1>, vector<2x256xf32>
    %c10 = arith.constant 10 : index
    %c0_24 = arith.constant 0 : index
    %60 = vector.load %arg8[%c10, %c0_24] : memref<18x256xf32, #tpu.memory_space<vmem>>, vector<2x256xf32>
    tpu.vector_store %arg8[%c10, %c0_24], %59 {strides = array<i32>} : memref<18x256xf32, #tpu.memory_space<vmem>>, vector<2x256xf32>,
    %61 = vector.extract_strided_slice %13 {offsets = [0, 32], sizes = [2, 256], strides = [1, 1]} : vector<2x290xf32> to vector<2x256xf32>
    %cst_25 = arith.constant 0.000000e+00 : f32
    %62 = vector.broadcast %cst_25 : f32 to vector<2x256xf32>
    %63 = vector.shape_cast %23 : vector<1x256xi1> to vector<1x256xi1>
    %64 = vector.broadcast %63 : vector<1x256xi1> to vector<2x256xi1>
    %65 = arith.select %64, %61, %62 : vector<2x256xi1>, vector<2x256xf32>
    %c12 = arith.constant 12 : index
    %c0_26 = arith.constant 0 : index
    %66 = vector.load %arg8[%c12, %c0_26] : memref<18x256xf32, #tpu.memory_space<vmem>>, vector<2x256xf32>
    tpu.vector_store %arg8[%c12, %c0_26], %65 {strides = array<i32>} : memref<18x256xf32, #tpu.memory_space<vmem>>, vector<2x256xf32>,
    %67 = vector.extract_strided_slice %13 {offsets = [0, 33], sizes = [2, 256], strides = [1, 1]} : vector<2x290xf32> to vector<2x256xf32>
    %c14 = arith.constant 14 : index
    %c0_27 = arith.constant 0 : index
    %68 = vector.load %arg8[%c14, %c0_27] : memref<18x256xf32, #tpu.memory_space<vmem>>, vector<2x256xf32>
    tpu.vector_store %arg8[%c14, %c0_27], %67 {strides = array<i32>} : memref<18x256xf32, #tpu.memory_space<vmem>>, vector<2x256xf32>,
    %69 = vector.extract_strided_slice %13 {offsets = [0, 34], sizes = [2, 256], strides = [1, 1]} : vector<2x290xf32> to vector<2x256xf32>
    %cst_28 = arith.constant 0.000000e+00 : f32
    %70 = vector.broadcast %cst_28 : f32 to vector<2x256xf32>
    %71 = vector.shape_cast %32 : vector<1x256xi1> to vector<1x256xi1>
    %72 = vector.broadcast %71 : vector<1x256xi1> to vector<2x256xi1>
    %73 = arith.select %72, %69, %70 : vector<2x256xi1>, vector<2x256xf32>
    %c16 = arith.constant 16 : index
    %c0_29 = arith.constant 0 : index
    %74 = vector.load %arg8[%c16, %c0_29] : memref<18x256xf32, #tpu.memory_space<vmem>>, vector<2x256xf32>
    tpu.vector_store %arg8[%c16, %c0_29], %73 {strides = array<i32>} : memref<18x256xf32, #tpu.memory_space<vmem>>, vector<2x256xf32>,
    %c0_30 = arith.constant 0 : index
    %c0_31 = arith.constant 0 : index
    %75 = vector.load %arg8[%c0_30, %c0_31] : memref<18x256xf32, #tpu.memory_space<vmem>>, vector<18x256xf32>
    %76 = arith.truncf %75 : vector<18x256xf32> to vector<18x256xbf16>
    %c0_32 = arith.constant 0 : index
    %c0_33 = arith.constant 0 : index
    %77 = vector.load %arg5[%c0_32, %c0_33] : memref<2x18xbf16, #tpu.memory_space<vmem>>, vector<2x18xbf16>
    %cst_34 = arith.constant dense<0.000000e+00> : vector<2x256xf32>
    %78 = tpu.matmul %77, %76, %cst_34 {dimension_numbers = #tpu.dot_dimension_numbers<[1], [0], [0], [1], [0, 0, 1, 1], [], []>} : vector<2x18xbf16>, vector<18x256xbf16>, vector<2x256xf32> -> vector<2x256xf32>
    %c0_35 = arith.constant 0 : index
    %c0_36 = arith.constant 0 : index
    %79 = vector.load %arg6[%c0_35, %c0_36] : memref<2x1xf32, #tpu.memory_space<vmem>>, vector<2x1xf32>
    %80 = vector.broadcast %79 : vector<2x1xf32> to vector<2x256xf32>
    %81 = arith.addf %78, %80 : vector<2x256xf32>
    %82 = tpu.concatenate %2, %81 in 1 : vector<2x256xf32>, vector<2x256xf32> -> vector<2x512xf32>
    %c0_37 = arith.constant 0 : index
    %c0_38 = arith.constant 0 : index
    %c0_39 = arith.constant 0 : index
    %83 = vector.load %arg7[%c0_37, %c0_38, %c0_39] : memref<1x2x512xf32, #tpu.memory_space<vmem>>, vector<1x2x512xf32>
    %84 = vector.shape_cast %83 : vector<1x2x512xf32> to vector<2x512xf32>
    %85 = vector.shape_cast %82 : vector<2x512xf32> to vector<1x2x512xf32>
    tpu.vector_store %arg7[%c0_37, %c0_38, %c0_39], %85 {strides = array<i32>} : memref<1x2x512xf32, #tpu.memory_space<vmem>>, vector<1x2x512xf32>,
    return
  }
  func.func @transform_0(%arg0: i32) -> (i32, i32, i32) {
    %c0_i32 = arith.constant 0 : i32
    %c0_i32_0 = arith.constant 0 : i32
    %c0_i32_1 = arith.constant 0 : i32
    return %arg0, %c0_i32, %c0_i32_0 : i32, i32, i32
  }
  func.func @transform_1(%arg0: i32) -> (i32, i32) {
    %c0_i32 = arith.constant 0 : i32
    %c0_i32_0 = arith.constant 0 : i32
    %c0_i32_1 = arith.constant 0 : i32
    return %c0_i32, %c0_i32_0 : i32, i32
  }
  func.func @transform_2(%arg0: i32) -> (i32, i32) {
    %c0_i32 = arith.constant 0 : i32
    %c0_i32_0 = arith.constant 0 : i32
    %c0_i32_1 = arith.constant 0 : i32
    return %c0_i32, %c0_i32_0 : i32, i32
  }
  func.func @transform_3(%arg0: i32) -> (i32, i32) {
    %c0_i32 = arith.constant 0 : i32
    %c0_i32_0 = arith.constant 0 : i32
    %c0_i32_1 = arith.constant 0 : i32
    return %c0_i32, %c0_i32_0 : i32, i32
  }
  func.func @transform_4(%arg0: i32) -> (i32, i32) {
    %c0_i32 = arith.constant 0 : i32
    %c0_i32_0 = arith.constant 0 : i32
    %c0_i32_1 = arith.constant 0 : i32
    return %c0_i32, %c0_i32_0 : i32, i32
  }
  func.func @transform_5(%arg0: i32) -> (i32, i32) {
    %c0_i32 = arith.constant 0 : i32
    %c0_i32_0 = arith.constant 0 : i32
    %c0_i32_1 = arith.constant 0 : i32
    return %c0_i32, %c0_i32_0 : i32, i32
  }
  func.func @transform_6(%arg0: i32) -> (i32, i32, i32) {
    %c0_i32 = arith.constant 0 : i32
    %c0_i32_0 = arith.constant 0 : i32
    %c0_i32_1 = arith.constant 0 : i32
    return %arg0, %c0_i32, %c0_i32_0 : i32, i32, i32
  }
}

</mosaic_0001>

<bundles_post_ra>
// kernel: tpu_custom_call.1
= control target key start
LH: loop header
LB: loop body
LE: loop exit
PB: predicated region body
PF: predicated region fallthrough
CT: control target
= control target key end

     0   :  { %11 = vsyncpa [#allocation4], 0  ;;  %s1167_s0 = inlined_call_operand.hbm [shape: f32[2,4,256], index: 0, kind: input, shape index: {}]   ;;  %s1168_s1 = inlined_call_operand.vmem [shape: s32[1,256], index: 1, kind: input, shape index: {}]   ;;  %s1169_s2 = inlined_call_operand.vmem [shape: bf16[2,2], index: 2, kind: input, shape index: {}]   ;;  %s1170_s3 = inlined_call_operand.vmem [shape: f32[2,1], index: 3, kind: input, shape index: {}]   ;;  %s1171_s4 = inlined_call_operand.vmem [shape: bf16[2,18], index: 4, kind: input, shape index: {}]   ;;  %s1172_s5 = inlined_call_operand.vmem [shape: f32[2,1], index: 5, kind: input, shape index: {}]   ;;  %s1173_s6 = inlined_call_operand.hbm [shape: f32[2,2,512], index: 6, kind: output, shape index: {}]  }
   0x1   :  { %13 = vsyncpa [#allocation4 + $0x1], 0 }
   0x2   :  { %14 = vsyncpa [#allocation5], 0 }
   0x3   :  { %16 = vsyncpa [#allocation5 + $0x1], 0  ;;  %s930_s21 = smov 0   ;;  %s932_s22 = smov 0  }
   0x4   :  { %s934_s23 = smov 0   ;;  %s936_s24 = smov 0  }
   0x5 LB: > { %s951_s25 = sadd.s32 4294967295, %s880_s24   ;;  %s708_s26 = sadd.s32 4294967294, %s880_s24   ;;  %s880_s24 = sphi %s936_s24, %s1190_s24   ;;  %s876_s23 = sphi %s934_s23, %s1189_s23   ;;  %s872_s22 = sphi %s932_s22, %s1188_s22   ;;  %s868_s21 = sphi %s930_s21, %s1187_s21  }
   0x6   : > { %s955_s27 = sadd.s32 1, %s880_s24   ;;  %s29_s28 = sadd.s32 1, %s876_s23 }
   0x7   : > { %s26_s29 = ssub.s32 %s880_s24, %s955_s27  ;;  %p36_p0 = scmp.ne.s32.totalorder %s876_s23, %s872_s22 }
   0x8   : > { %p27_p1 = scmp.eq.s32.totalorder %s26_s29, 0  ;;  %p37_p2 = scmp.eq.s32.totalorder %s880_s24, 0 }
   0x9   : > { %p42_p3 = scmp.ne.s32.totalorder %s872_s22, %s868_s21  ;;  %p43_p4 = scmp.eq.s32.totalorder %s951_s25, 0 }
   0xa   : > { %s967_s30 = scalar_select %p27_p1, %s876_s23, %s29_s28  }
   0xb   : > { %p969_p5 = por %p37_p2, %p36_p0  ;;  %p973_p6 = por %p43_p4, %p42_p3 }
   0xc   : > { %p171_p7 = scmp.eq.s32.totalorder %s951_s25, 1  ;;  %p177_p8 = scmp.eq.s32.totalorder %s708_s26, 1 }
   0xd   : > { %s1177_s8 = scalar_select %p973_p6, 1, 0 }
   0xe   : > { %p740_p10 = scmp.lt.s32.totalorder %s880_s24, 2  ;;  %p980_p11 = por %p171_p7, %p36_p0 }
   0xf   : > { %p984_p12 = por %p177_p8, %p42_p3  ;;  %s212_s11 = sand.u32 1, %s876_s23  }
  0x10   : > { %s1178_s9 = scalar_select %p980_p11, 1, 0 }
  0x11   : > { %s1179_s10 = scalar_select %p984_p12, 1, 0 }
  0x12   : > { %s726_s12 = sshll.u32 %s880_s24, 7  ;;  %s711_s13 = sshll.u32 %s212_s11, 3 }
  0x13   : > { %s993_s16 = scalar_lea.hbm %s1167_s0, %s726_s12  ;;  %s216_s17 = scalar_lea.vmem [#allocation3], %s711_s13 }
  0x14   : > { %s224_s18 = sshll.u32 %s216_s17, 4  ;;  %p997_p13 = pnand %p740_p10, %p969_p5  ;;  %s1001_s18 = int_to_ptr.vmem [resolvable:$true] %s224_s18 }
  0x15   : > { %s213_s20 = scalar_lea.sflag [#allocation4], %s212_s11  ;;  %s788_s26 = scalar_lea.hbm %s993_s16, 128 }
  0x16   : > { %p789_p2 = scmp.ne.s32.totalorder %s993_s16, %s788_s26  ;;  %p790_p3 = pneg %p997_p13 }
  0x17   : > { %s793_s7 = scalar_lea.hbm %s1167_s0, 256  ;;  %p794_p5 = scmp.lt.s32.totalorder %s993_s16, %s1167_s0 }
  0x18   : > { %p791_p4 = pnand %p790_p3, %p789_p2  ;;  %p795_p8 = scmp.lt.s32.totalorder %s793_s7, %s788_s26 }
  0x1a   : > { %p792_p7 = pneg %p791_p4  ;;  %p796_p10 = por %p795_p8, %p794_p5 }
  0x1c   : > { %p797_p9 = pnand %p796_p10, %p792_p7 }
  0x1e   : > { %800 = shalt.err (!%p797_p9)
}
  0x1f   : > { %s801_s11 = scalar_lea.vmem %s1001_s18, 128  ;;  %s882_s14 = smov [#allocation3]  }
  0x20   : > { %p802_p0 = scmp.ne.s32.totalorder %s1001_s18, %s801_s11  ;;  %s806_s15 = sshll.u32 %s882_s14, 4  ;;  %s807_s15 = int_to_ptr.vmem [resolvable:$false] %s806_s15 }
  0x21   : > { %s808_s17 = scalar_lea.vmem %s807_s15, 256  ;;  %p809_p4 = scmp.lt.s32.totalorder %s1001_s18, %s807_s15 }
  0x22   : > { %p804_p1 = pnand %p802_p0, %p790_p3  ;;  %p810_p12 = scmp.lt.s32.totalorder %s808_s17, %s801_s11 }
  0x24   : > { %p805_p2 = pneg %p804_p1  ;;  %p811_p11 = por %p810_p12, %p809_p4 }
  0x26   : > { %p812_p6 = pnand %p811_p11, %p805_p2 }
  0x28   : > { %815 = shalt.err (!%p812_p6)
}
  0x29   : > { %735 = dma.hbm_to_vmem [thread:$0]  (!%p997_p13), %s993_s16, 128, %s1001_s18, %s213_s20  }
  0x2a   : > { %p1181_p9 = scmp.lt.s32.totalorder %s880_s24, 3  ;;  %p1182_p7 = scmp.ge.s32.totalorder %s880_s24, 1 }
  0x2c   : > { %p230_p0 = pnand %p1182_p7, %p1181_p9 }
  0x2d   : > { %s1028_s26 = sand.u32 (!%p230_p0), 1, %s872_s22   ;;  %p1183_p6 = scmp.ne.s32.totalorder (!%p230_p0), %s1177_s8, 0 }
  0x2e   : > { %233 = sbr.rel (%p230_p0) target bundleno = 765 (0x2fd), region = 44  ;;  %s715_s28 = sshll.u32 (!%p230_p0), %s1028_s26, 3 }
  0x2f   : > { %s236_s29 = scalar_lea.sflag (!%p230_p0), [#allocation4], %s1028_s26  ;;  %s239_s19 = scalar_lea.vmem (!%p230_p0), [#allocation3], %s715_s28 }
  0x33   : > { %859 = dma.done.wait (%p1183_p6), %s236_s29, 128  }
  0x34   : > { %861 = vsyncadd (%p1183_p6), %s236_s29, 4294967168  ;;  %v883_v0 = vmov 0   ;;  %v1042_v1 = vld [vmem:[%s239_s19] sm:$0xff]  ;;  %v276_v2 = vld [vmem:[%s1170_s3] sm:$0x3]  ;;  %vm290_vm0 = vcmask 1040384   ;;  %v363_v22 = vlaneseq }
  0x35   : > { %329 = vmatprep.mubr.bf16.mxu0 %v883_v0  ;;  %785 = vset.pattern.permute.xlu0 %v883_v0  ;;  %v1049_v3 = vcombine.high %v1042_v1, %v1042_v1  ;;  %v273_v4 = vpack.c.bf16 %v1042_v1, %v1042_v1  ;;  %v275_v10 = vld [vmem:[%s1169_s2] sm:$0x1]  ;;  %vm286_vm1 = vcmask 15360   ;;  %s884_s7 = smov 17   ;;  %vm346_vm5 = vcmask 138240   ;;  %s885_s11 = smov 126  }
  0x36   : > { %593 = vmatprep.mubr.bf16.mxu1 %v883_v0  ;;  %786 = vset.pattern.permute.xlu1 %v883_v0  ;;  %v1065_v20 = vld [vmem:[%s1168_s1] sm:$0x3]  ;;  %v1068_v23 = vshrl.u32 %v363_v22, 7  ;;  %s886_s14 = smov 94   ;;  %s887_s15 = smov 110   ;;  %vm525_vm11 = vcmask 769024  }
  0x37   : > { %279 = vperm.xlu0 %785, %v276_v2   ;;  %v274_v5 = vpack.c.bf16 %v1049_v3, %v1049_v3  ;;  %v604_v6 = vcombine.low %v1042_v1, %v1049_v3  ;;  %v284_v7 = vrot.slane %v273_v4, 1  ;;  %v354_v21 = vadd.s32 4294967295, %v1065_v20  ;;  %s888_s17 = smov 112   ;;  %s889_s29 = smov 96   ;;  %v545_v42 = vld [vmem:[%s1172_s5] sm:$0x3] }
  0x38   : > { %v365_v24 = vsub.s32 0, %v1068_v23  ;;  %v369_v26 = vsub.s32 1, %v1068_v23  ;;  %s890_s19 = smov 111   ;;  %s891_s16 = smov 127   ;;  %v358_v43 = vadd.s32 1, %v1065_v20  ;;  %vm412_vm13 = vcmask 1031168  }
  0x39   : > { %v285_v8 = vrot.slane %v274_v5, 1  ;;  %v292_v9 = vsel %vm290_vm0, %v284_v7, 0  ;;  %vm355_vm2 = vcmp.ge.s32.totalorder %v354_v21, 0  ;;  %vm356_vm3 = vcmp.lt.s32.totalorder %v354_v21, 16  ;;  %s892_s18 = smov 95   ;;  %s727_s13 = sshll.u32 %s951_s25, 7 }
  0x3a   : > { %vm357_vm4 = vmand %vm355_vm2, %vm356_vm3  ;;  %vm359_vm8 = vcmp.ge.s32.totalorder %v358_v43, 0  ;;  %vm360_vm9 = vcmp.lt.s32.totalorder %v358_v43, 16  ;;  %vm433_vm15 = vcmask 916480   ;;  %vm488_vm2 = vcmask 785408   ;;  %p1184_p12 = scmp.ne.s32.totalorder %s1178_s9, 0 }
  0x3b   : > { %717 = vmatprep.subr.msk.bf16.mxu0 %vm290_vm0, %v285_v8  ;;  %v362_v25 = vsel %vm357_vm4, 1, %v883_v0  ;;  %vm361_vm10 = vmand %vm359_vm8, %vm360_vm9  ;;  %vm454_vm3 = vcmask 908288   ;;  %vm512_vm4 = vcmask 777216  }
  0x3c   : > { %312 = vmatpush1.bf16.msra.mxu0 %v292_v9  ;;  %v1075_v27 = vrot.slane %v362_v25, %v365_v24  ;;  %v1079_v28 = vrot.slane %v362_v25, %v369_v26  ;;  %v395_v46 = vsel %vm361_vm10, 1, %v883_v0 }
  0x3d   : > { %v399_v47 = vrot.slane %v395_v46, %v365_v24  ;;  %v403_v50 = vrot.slane %v395_v46, %v369_v26 }
  0x3e   : > { %vm371_vm6 = vcmp.eq.s32.totalorder %v1075_v27, 1  ;;  %vm372_vm7 = vcmp.eq.s32.totalorder %v1079_v28, 1 }
  0x3f   : > { %718 = vmatmul.mubr.msk.bf16.vlgmr.msra.gmra.mxu0 %vm286_vm1, %v275_v10  ;;  %vm404_vm12 = vcmp.eq.s32.totalorder %v399_v47, 1  ;;  %vm405_vm14 = vcmp.eq.s32.totalorder %v403_v50, 1  ;;  %vm467_vm1 = vcmask 900096  }
  0xb2   : > { %v280_v11 = vpop.permute.xlu0 %279 }
  0xff   : > { %v331_v12 = vpop.f32.mrf.mxu0 }
 0x100   : > { %v332_v13 = vadd.f32 %v331_v12, %v280_v11 }
 0x101   : > { %v333_v14 = vpop.f32.mrf.mxu0 }
 0x102   : > { %v338_v15 = vmax.f32 %v332_v13, 0.0  ;;  %v334_v16 = vadd.f32 %v333_v14, %v280_v11 }
 0x103   : > { %v335_v17 = vpop.f32.mrf.mxu0 }
 0x104   : > { %v339_v18 = vmax.f32 %v334_v16, 0.0  ;;  %342 = vrot.lane.b32.xlu0 %v338_v15, %s884_s7 }
 0x105   : > { %v336_v19 = vpop.f32.mrf.mxu0 }
 0x106   : > { %344 = vrot.lane.b32.xlu1 %v339_v18, %s884_s7 }
 0x176   : > { %v343_v29 = vpop.permute.xlu0 %342 }
 0x177   : > { %v351_v30 = vsel %vm346_vm5, 0.0, %v343_v29 }
 0x178   : > { %v345_v31 = vpop.permute.xlu1 %344  ;;  %406 = vrot.lane.b32.xlu0 %v351_v30, %s885_s11  ;;  %519 = vrot.lane.b32.xlu1 %v351_v30, %s886_s14  ;;  %v373_v32 = vsel %vm371_vm6, %v351_v30, 0.0  ;;  %v379_v36 = vrot.slane %v351_v30, 6  ;;  %v503_v41 = vrot.slane %v351_v30, 2 }
 0x179   : > { %v347_v33 = vsel %vm346_vm5, %v343_v29, %v345_v31  ;;  %375 = vst [vmem:[#allocation2 + $0x28] sm:$0x3] %v373_v32  ;;  %v352_v35 = vsel %vm346_vm5, %v345_v31, 0.0  ;;  %vm551_vm5 = vcmask 146432  }
 0x17a   : > { %v374_v34 = vsel %vm372_vm7, %v347_v33, 0.0  ;;  %v381_v37 = vrot.slane %v352_v35, 6  ;;  %v380_v38 = vrot.slane %v347_v33, 6  ;;  %v505_v39 = vrot.slane %v352_v35, 2 }
 0x17b   : > { %376 = vst [vmem:[#allocation2 + $0x10] sm:$0x3] %v374_v34  ;;  %v504_v40 = vrot.slane %v347_v33, 2 }
 0x17c   : > { %461 = vrot.lane.b32.xlu0 %v351_v30, %s887_s15  ;;  %427 = vrot.lane.b32.xlu1 %v351_v30, %s888_s17 }
 0x180   : > { %482 = vrot.lane.b32.xlu1 %v351_v30, %s889_s29  ;;  %521 = vrot.lane.b32.xlu0 %v347_v33, %s886_s14 }
 0x184   : > { %523 = vrot.lane.b32.xlu1 %v352_v35, %s886_s14  ;;  %408 = vrot.lane.b32.xlu0 %v347_v33, %s885_s11 }
 0x188   : > { %410 = vrot.lane.b32.xlu1 %v352_v35, %s885_s11  ;;  %429 = vrot.lane.b32.xlu0 %v347_v33, %s888_s17  ;;  %s267_s11 = scalar_lea.vmem [#allocation6], %s715_s28 }
 0x189   : > { %s638_s14 = sshll.u32 %s267_s11, 4  ;;  %s639_s14 = int_to_ptr.vmem [resolvable:$true] %s638_s14 }
 0x18c   : > { %431 = vrot.lane.b32.xlu1 %v352_v35, %s888_s17  ;;  %463 = vrot.lane.b32.xlu0 %v347_v33, %s887_s15 }
 0x190   : > { %465 = vrot.lane.b32.xlu1 %v352_v35, %s887_s15  ;;  %484 = vrot.lane.b32.xlu0 %v347_v33, %s889_s29 }
 0x194   : > { %486 = vrot.lane.b32.xlu1 %v352_v35, %s889_s29  ;;  %450 = vrot.lane.b32.xlu0 %v347_v33, %s890_s19  ;;  %s636_s29 = scalar_lea.hbm %s1173_s6, %s727_s13 }
 0x198   : > { %452 = vrot.lane.b32.xlu1 %v352_v35, %s890_s19  ;;  %382 = vrot.lane.b32.xlu0 %v379_v36, %s891_s16 }
 0x19c   : > { %386 = vrot.lane.b32.xlu1 %v381_v37, %s891_s16  ;;  %384 = vrot.lane.b32.xlu0 %v380_v38, %s891_s16  ;;  %s816_s16 = scalar_lea.vmem %s639_s14, 128 }
 0x19d   : > { %p817_p11 = scmp.ne.s32.totalorder %s639_s14, %s816_s16 }
 0x19f   : > { %p818_p13 = pnand %p817_p11, %p1184_p12 }
 0x1a0   : > { %510 = vrot.lane.b32.xlu1 %v505_v39, %s892_s18  ;;  %508 = vrot.lane.b32.xlu0 %v504_v40, %s892_s18 }
 0x1a1   : > { %p819_p1 = pneg %p818_p13 }
 0x1a4   : > { %448 = vrot.lane.b32.xlu1 %v351_v30, %s890_s19  ;;  %506 = vrot.lane.b32.xlu0 %v503_v41, %s892_s18  ;;  %s624_s19 = scalar_lea.sflag [#allocation5], %s1028_s26  ;;  %s894_s18 = smov [#allocation6]  }
 0x1a5   : > { %s820_s8 = sshll.u32 %s894_s18, 4  ;;  %s821_s8 = int_to_ptr.vmem [resolvable:$false] %s820_s8 }
 0x1a6   : > { %s822_s25 = scalar_lea.vmem %s821_s8, 256  ;;  %p823_p3 = scmp.lt.s32.totalorder %s639_s14, %s821_s8 }
 0x1a7   : > { %p824_p5 = scmp.lt.s32.totalorder %s822_s25, %s816_s16 }
 0x1a8   : > { %548 = vperm.xlu1 %786, %v545_v42  }
 0x1a9   : > { %p825_p8 = por %p824_p5, %p823_p3 }
 0x1ab   : > { %p826_p10 = pnand %p825_p8, %p819_p1 }
 0x1ea   : > { %v407_v44 = vpop.permute.xlu0 %406  ;;  %v520_v45 = vpop.permute.xlu1 %519 }
 0x1ee   : > { %v462_v48 = vpop.permute.xlu0 %461  ;;  %v428_v49 = vpop.permute.xlu1 %427 }
 0x1f2   : > { %v483_v51 = vpop.permute.xlu1 %482  ;;  %v522_v52 = vpop.permute.xlu0 %521 }
 0x1f3   : > { %v526_v53 = vsel %vm525_vm11, %v520_v45, %v522_v52 }
 0x1f4   : > { %v530_v54 = vsel %vm404_vm12, %v526_v53, 0.0 }
 0x1f5   : > { %532 = vst [vmem:[#allocation2 + $0x18] sm:$0x3] %v530_v54 }
 0x1f6   : > { %v524_v55 = vpop.permute.xlu1 %523  ;;  %v409_v56 = vpop.permute.xlu0 %408 }
 0x1f7   : > { %v527_v57 = vsel %vm525_vm11, %v522_v52, %v524_v55  ;;  %v413_v58 = vsel %vm412_vm13, %v407_v44, %v409_v56 }
 0x1f8   : > { %v531_v59 = vsel %vm405_vm14, %v527_v57, 0.0  ;;  %v417_v60 = vsel %vm404_vm12, %v413_v58, 0.0  ;;  %v893_v57 = vmov 1983009808  }
 0x1f9   : > { %533 = vst [vmem:[#allocation2 + $0x20] sm:$0x3] %v531_v59  ;;  %v421_v61 = vrot.slane %v417_v60, 4  ;;  %v607_v58 = vunpack.c.l.s4 %v893_v57 }
 0x1fa   : > { %v411_v62 = vpop.permute.xlu1 %410  ;;  %v430_v63 = vpop.permute.xlu0 %429 }
 0x1fb   : > { %425 = vst [vmem:[#allocation2 + $0x28] sm:$0x30] %v421_v61  ;;  %v414_v0 = vsel %vm412_vm13, %v409_v56, %v411_v62  ;;  %v434_v2 = vsel %vm433_vm15, %v428_v49, %v430_v63  ;;  %v544_v56 = vld [vmem:[%s1171_s4] sm:$0x1]  ;;  %v608_v59 = vunpack.c.0.s8 %v607_v58 }
 0x1fc   : > { %v418_v4 = vsel %vm405_vm14, %v414_v0, 0.0  ;;  %v438_v5 = vsel %vm371_vm6, %v434_v2, 0.0  ;;  %v538_v7 = vld [vmem:[#allocation2 + $0x18] sm:$0x3] }
 0x1fd   : > { %v422_v8 = vrot.slane %v418_v4, 4  ;;  %v442_v9 = vrot.slane %v438_v5, 2  ;;  %v542_v14 = vpack.c.bf16 %v538_v7, %v538_v7  ;;  %v611_v62 = vsub.s32 %v608_v59, %v1068_v23 }
 0x1fe   : > { %v432_v10 = vpop.permute.xlu1 %431  ;;  %v464_v11 = vpop.permute.xlu0 %463 }
 0x1ff   : > { %426 = vst [vmem:[#allocation2 + $0x10] sm:$0x30] %v422_v8  ;;  %446 = vst [vmem:[#allocation2 + $0x28] sm:$0xc0] %v442_v9  ;;  %v435_v12 = vsel %vm433_vm15, %v430_v63, %v432_v10  ;;  %v468_v13 = vsel %vm467_vm1, %v462_v48, %v464_v11  ;;  %v556_v26 = vsel %vm290_vm0, %v542_v14, 0  ;;  %v612_v7 = vrot.slane %v604_v6, %v611_v62 }
 0x200   : > { %v439_v15 = vsel %vm372_vm7, %v435_v12, 0.0  ;;  %v472_v16 = vsel %vm404_vm12, %v468_v13, 0.0  ;;  %v539_v17 = vld [vmem:[#allocation2 + $0x20] sm:$0x3] }
 0x201   : > { %v443_v18 = vrot.slane %v439_v15, 2  ;;  %v476_v19 = vrot.slane %v472_v16, 6  ;;  %v543_v20 = vpack.c.bf16 %v539_v17, %v539_v17 }
 0x202   : > { %v466_v21 = vpop.permute.xlu1 %465  ;;  %v485_v22 = vpop.permute.xlu0 %484 }
 0x203   : > { %447 = vst [vmem:[#allocation2 + $0x10] sm:$0xc0] %v443_v18  ;;  %480 = vst [vmem:[#allocation2 + $0x8] sm:$0xc] %v476_v19  ;;  %v469_v24 = vsel %vm467_vm1, %v464_v11, %v466_v21  ;;  %v489_v25 = vsel %vm488_vm2, %v483_v51, %v485_v22  ;;  %719 = vmatprep.subr.msk.bf16.mxu1 %vm290_vm0, %v543_v20  ;;  %vm388_vm0 = vcmask 1039360  }
 0x204   : > { %v473_v29 = vsel %vm405_vm14, %v469_v24, 0.0  ;;  %v493_v30 = vsel %vm371_vm6, %v489_v25, 0.0  ;;  %574 = vmatpush1.bf16.msra.mxu1 %v556_v26 }
 0x205   : > { %v477_v31 = vrot.slane %v473_v29, 6  ;;  %v497_v32 = vrot.slane %v493_v30, 4 }
 0x206   : > { %v487_v33 = vpop.permute.xlu1 %486  ;;  %v451_v34 = vpop.permute.xlu0 %450 }
 0x207   : > { %481 = vst [vmem:[#allocation2] sm:$0xc] %v477_v31  ;;  %501 = vst [vmem:[#allocation2 + $0x8] sm:$0x30] %v497_v32  ;;  %v490_v35 = vsel %vm488_vm2, %v485_v22, %v487_v33 }
 0x208   : > { %v494_v36 = vsel %vm372_vm7, %v490_v35, 0.0 }
 0x209   : > { %v498_v37 = vrot.slane %v494_v36, 4 }
 0x20a   : > { %v453_v38 = vpop.permute.xlu1 %452  ;;  %v383_v39 = vpop.permute.xlu0 %382 }
 0x20b   : > { %502 = vst [vmem:[#allocation2] sm:$0x30] %v498_v37  ;;  %v456_v27 = vsel %vm454_vm3, %v451_v34, %v453_v38 }
 0x20c   : > { %460 = vst [vmem:[#allocation2] sm:$0x3] %v456_v27 }
 0x20e   : > { %v387_v40 = vpop.permute.xlu1 %386  ;;  %v385_v41 = vpop.permute.xlu0 %384 }
 0x20f   : > { %v389_v42 = vsel %vm388_vm0, %v383_v39, %v385_v41  ;;  %v390_v43 = vsel %vm388_vm0, %v385_v41, %v387_v40 }
 0x210   : > { %393 = vst [vmem:[#allocation2 + $0x28] sm:$0xc] %v389_v42  ;;  %394 = vst [vmem:[#allocation2 + $0x10] sm:$0xc] %v390_v43 }
 0x212   : > { %v511_v44 = vpop.permute.xlu1 %510  ;;  %v509_v45 = vpop.permute.xlu0 %508 }
 0x213   : > { %v514_v28 = vsel %vm512_vm4, %v509_v45, %v511_v44 }
 0x214   : > { %518 = vst [vmem:[#allocation2] sm:$0xc0] %v514_v28 }
 0x216   : > { %v449_v46 = vpop.permute.xlu1 %448  ;;  %v507_v47 = vpop.permute.xlu0 %506 }
 0x217   : > { %v455_v48 = vsel %vm454_vm3, %v449_v46, %v451_v34  ;;  %v513_v49 = vsel %vm512_vm4, %v507_v47, %v509_v45  ;;  %v535_v50 = vld [vmem:[#allocation2 + $0x10] sm:$0xff]  ;;  %v534_v53 = vld [vmem:[#allocation2 + $0x28] sm:$0xff] }
 0x218   : > { %459 = vst [vmem:[#allocation2 + $0x8] sm:$0x3] %v455_v48  ;;  %517 = vst [vmem:[#allocation2 + $0x8] sm:$0xc0] %v513_v49 }
 0x21b   : > { %v537_v51 = vld [vmem:[#allocation2] sm:$0xff] }
 0x21c   : > { %v541_v52 = vpack.c.bf16 %v537_v51, %v535_v50 }
 0x21e   : > { %575 = vmatprep.subr.bf16.mxu1 %v541_v52 }
 0x21f   : > { %v536_v54 = vld [vmem:[#allocation2 + $0x8] sm:$0xff] }
 0x220   : > { %v540_v55 = vpack.c.bf16 %v536_v54, %v534_v53 }
 0x222   : > { %576 = vmatpush1.bf16.msra.mxu1 %v540_v55 }
 0x223   : > { %v549_v60 = vpop.permute.xlu1 %548 }
 0x225   : > { %720 = vmatmul.mubr.msk.bf16.vlgmr.msra.gmra.mxu1 %vm551_vm5, %v544_v56 }
 0x2e5   : > { %v595_v61 = vpop.f32.mrf.mxu1 }
 0x2e6   : > { %v596_v0 = vadd.f32 %v595_v61, %v549_v60 }
 0x2e7   : > { %v597_v63 = vpop.f32.mrf.mxu1 }
 0x2e8   : > { %v598_v2 = vadd.f32 %v597_v63, %v549_v60 }
 0x2e9   : > { %v599_v4 = vpop.f32.mrf.mxu1 }
 0x2ea   : > { %v605_v5 = vcombine.low %v596_v0, %v598_v2 }
 0x2eb   : > { %v600_v8 = vpop.f32.mrf.mxu1 }
 0x2ec   : > { %v619_v9 = vrot.slane %v605_v5, %v611_v62 }
 0x2ee   : > { %v620_v10 = vcombine.low %v612_v7, %v619_v9 }
 0x2f0   : > { %622 = vst [vmem:[%s267_s11] sm:$0xff] %v620_v10 }
 0x2f1   : > { %829 = shalt.err (!%p826_p10)
}
 0x2f2   : > { %s830_s28 = scalar_lea.hbm %s636_s29, 128  ;;  %s834_s7 = scalar_lea.hbm %s1173_s6, 256 }
 0x2f3   : > { %p831_p2 = scmp.ne.s32.totalorder %s636_s29, %s830_s28  ;;  %p835_p7 = scmp.lt.s32.totalorder %s636_s29, %s1173_s6 }
 0x2f4   : > { %p836_p0 = scmp.lt.s32.totalorder %s834_s7, %s830_s28 }
 0x2f5   : > { %p832_p4 = pnand %p831_p2, %p1184_p12 }
 0x2f6   : > { %p837_p6 = por %p836_p0, %p835_p7 }
 0x2f7   : > { %p833_p9 = pneg %p832_p4 }
 0x2f9   : > { %p838_p11 = pnand %p837_p6, %p833_p9 }
 0x2fb   : > { %841 = shalt.err (!%p838_p11)
}
 0x2fc   : > { %730 = dma.vmem_to_hbm [thread:$0]  (%p1184_p12), %s639_s14, 128, %s636_s29, %s624_s19  }
 0x2fd PF: > { %s650_s11 = sand.u32 1, %s868_s21   ;;  %p1185_p13 = scmp.ne.s32.totalorder %s1179_s10, 0 }
 0x2fe   : > { %p1186_p1 = scmp.ge.s32.totalorder %s880_s24, 2  ;;  %s651_s15 = scalar_lea.sflag [#allocation5], %s650_s11 }
 0x300   : > { %p737_p3 = pnand %p1186_p1, %p1185_p13 }
 0x302   : > { %p738_p5 = pneg %p737_p3 }
 0x304   : > { %863 = dma.done.wait (%p738_p5), %s651_s15, 128  }
 0x305   : > { %865 = vsyncadd (%p738_p5), %s651_s15, 4294967168  ;;  %p19_p8 = scmp.ge.s32.totalorder %s955_s27, 4   ;;  %s1187_s21 = smov %s872_s22 }
 0x306   : > { %s1188_s22 = smov %s876_s23  ;;  %s1189_s23 = smov %s967_s30 }
 0x307   : > { %s1190_s24 = smov %s955_s27  ;;  %21 = sbr.rel (!%p19_p8) target bundleno = 5 (0x5), region = 89 }
 0x30c   :  { %656 = vsyncpa [#allocation4], 1 }
 0x30d   :  { %658 = vsyncpa [#allocation4 + $0x1], 1 }
 0x30e   :  { %659 = vsyncpa [#allocation5], 1 }
 0x30f   :  { %661 = vsyncpa [#allocation5 + $0x1], 1 }

</bundles_post_ra>
